<compile_context>
chip_gen: v7x
topology: tpu7x:2x2x1
jax: 0.10.0
libtpu: 0.0.40
codegen_flags: <defaults>
</compile_context>

<pallas_src>
import jax
import jax.numpy as jnp
from jax.experimental import pallas as pl
from jax.experimental.pallas import tpu as pltpu


_LOSS_LANE = 0      # packed-output lane holding the mean CE loss
_CORRECT_LANE = 1   # packed-output lane holding the total #correct
_TOT_OFF = 8        # per-class totals start here; corrects start at 8 + C


def _ce_acc_kernel(pred_ref, label_ref, out_ref):
    """Cross-entropy (mean), correct count, per-class counts -> one packed row."""
    logits = pred_ref[...]                       # (B, C) float32
    labels = label_ref[...]                      # (B, 1) int32
    B, C = logits.shape
    out_w = out_ref.shape[1]
    cor_off = _TOT_OFF + C

    # class indices along the lane axis (TPU iota must be >= 2D)
    class_ids = jax.lax.broadcasted_iota(jnp.int32, (B, C), 1)
    onehot = class_ids == labels                 # (B, C)

    # --- cross entropy with mean reduction (matches nn.CrossEntropyLoss) ---
    # NOTE: out-of-range labels silently contribute 0 NLL (no ignore_index),
    # same assumption as the original module.
    row_max = jnp.max(logits, axis=-1, keepdims=True)             # (B, 1)
    z = logits - row_max
    lse = jnp.log(jnp.sum(jnp.exp(z), axis=-1, keepdims=True))    # (B, 1)
    logp = z - lse                                                # (B, C)
    loss = -jnp.sum(jnp.where(onehot, logp, 0.0)) * (1.0 / B)     # scalar

    # --- argmax (first-max index, torch.argmax semantics) + correct count ---
    is_max = logits == row_max
    pred_idx = jnp.min(jnp.where(is_max, class_ids, C),
                       axis=-1, keepdims=True)                    # (B, 1)
    correct_mask = pred_idx == labels                             # (B, 1)
    correct = jnp.sum(correct_mask.astype(jnp.float32))           # scalar

    # --- per-class total / correct counts, placed at shifted lanes ---
    lanes = jax.lax.broadcasted_iota(jnp.int32, (B, out_w), 1)    # (B, out_w)
    tot_hits = (lanes - _TOT_OFF) == labels                       # lane 8 + label
    cor_hits = ((lanes - cor_off) == labels) & correct_mask       # lane 8 + C + label
    counts = jnp.sum(jnp.where(tot_hits, 1.0, 0.0) +
                     jnp.where(cor_hits, 1.0, 0.0),
                     axis=0, keepdims=True)                       # (1, out_w)

    # --- header (loss, correct) + counts -> single lane-dense store ---
    hdr_lane = jax.lax.broadcasted_iota(jnp.int32, (1, out_w), 1)
    header = jnp.where(hdr_lane == _LOSS_LANE, loss,
                       jnp.where(hdr_lane == _CORRECT_LANE, correct, 0.0))
    out_ref[...] = header + counts


@jax.jit
def _emotion_loss_stats(predictions, emotions):
    """Returns (loss scalar on device, packed (1, OUT_W) stats row)."""
    B, C = predictions.shape
    out_w = max(128, -(-(_TOT_OFF + 2 * C) // 128) * 128)   # lane-dense width
    labels2d = emotions.reshape(B, 1).astype(jnp.int32)

    packed = pl.pallas_call(
        _ce_acc_kernel,
        out_shape=jax.ShapeDtypeStruct((1, out_w), jnp.float32),
        in_specs=[
            pl.BlockSpec(memory_space=pltpu.MemorySpace.VMEM),
            pl.BlockSpec(memory_space=pltpu.MemorySpace.VMEM),
        ],
        out_specs=pl.BlockSpec(memory_space=pltpu.MemorySpace.VMEM),
    )(predictions.astype(jnp.float32), labels2d)

    loss = packed[0, _LOSS_LANE]
    return loss, packed


class EmotionPredictorLossPallas:
    """JAX/Pallas port of EmotionPredictorLoss.forward."""

    def __init__(self, pitch_feature_level, energy_feature_level,
                 emotion_label_dict, sum_emotions):
        self.emotion2id = emotion_label_dict
        self.id2emotion = {v: k for k, v in self.emotion2id.items()}
        self.sum_emotions = sum_emotions

    def __call__(self, inputs, predictions):
        emotions = inputs[2]                      # (B,) int labels
        B, C = predictions.shape

        loss, packed = _emotion_loss_stats(predictions, emotions)

        # Single device->host transfer for every scalar statistic.
        stats = jax.device_get(packed)[0]
        loss_item = float(stats[_LOSS_LANE])
        correct_num = int(round(float(stats[_CORRECT_LANE])))
        acc = correct_num / B
        tot = stats[_TOT_OFF:_TOT_OFF + C]
        cor = stats[_TOT_OFF + C:_TOT_OFF + 2 * C]

        loss_values = {}
        for emo in self.emotion2id.keys():
            loss_values['total-num_' + emo] = 0
            loss_values['total-collect-num_' + emo] = 0
        if len(self.sum_emotions) > 0:
            key = '+'.join(self.sum_emotions)
            loss_values['total-num_' + key] = 0
            loss_values['total-collect-num_' + key] = 0

        for emo, cid in self.emotion2id.items():
            n_tot = int(round(float(tot[cid])))
            n_cor = int(round(float(cor[cid])))
            loss_values['total-num_' + emo] += n_tot
            loss_values['total-collect-num_' + emo] += n_cor
            if emo in self.sum_emotions:
                key = '+'.join(self.sum_emotions)
                loss_values['total-num_' + key] += n_tot
                loss_values['total-collect-num_' + key] += n_cor

        loss_values.update({'accuracy': acc,
                            'class_loss': loss_item,
                            'total_loss': loss_item})
        return loss, loss_values


if __name__ == "__main__":
    key = jax.random.PRNGKey(0)
    k_pred, k_lab = jax.random.split(key)

    B, C = 8, 4                                   # batch=8, 4 emotion classes
    emotion_label_dict = {"angry": 0, "happy": 1, "neutral": 2, "sad": 3}
    sum_emotions = ["angry", "sad"]

    predictions = jax.random.normal(k_pred, (B, C), dtype=jnp.float32)
    emotions = jax.random.randint(k_lab, (B,), 0, C, dtype=jnp.int32)

    # inputs tuple mirrors the torch call convention: inputs[2] == emotions
    inputs = (None, None, emotions)

    loss_mod = EmotionPredictorLossPallas(
        pitch_feature_level="phoneme_level",
        energy_feature_level="phoneme_level",
        emotion_label_dict=emotion_label_dict,
        sum_emotions=sum_emotions,
    )

    loss, loss_values = loss_mod(inputs, predictions)
    jax.block_until_ready(loss)

    # --- sanity checks against a pure-JAX reference of CrossEntropyLoss ---
    logp_ref = jax.nn.log_softmax(predictions, axis=-1)
    ref_loss = -jnp.mean(logp_ref[jnp.arange(B), emotions])
    assert abs(float(ref_loss) - float(loss)) < 1e-5

    preds_ref = jnp.argmax(predictions, axis=-1)
    ref_acc = float(jnp.mean((preds_ref == emotions).astype(jnp.float32)))
    assert abs(ref_acc - loss_values['accuracy']) < 1e-6

    preds_np = jax.device_get(preds_ref)
    emos_np = jax.device_get(emotions)
    for emo, cid in emotion_label_dict.items():
        exp_tot = int((emos_np == cid).sum())
        exp_cor = int(((emos_np == cid) & (preds_np == emos_np)).sum())
        assert loss_values['total-num_' + emo] == exp_tot
        assert loss_values['total-collect-num_' + emo] == exp_cor

    print("KERNEL_OK")
</pallas_src>

<mosaic_0001>
module attributes {stable_mosaic.version = 11 : i64} {
  func.func @_ce_acc_kernel(%arg0: memref<8x4xf32, #tpu.memory_space<vmem>>, %arg1: memref<8x1xi32, #tpu.memory_space<vmem>>, %arg2: memref<1x128xf32, #tpu.memory_space<vmem>>) attributes {dimension_semantics = [], scalar_prefetch = 0 : i64, scratch_operands = 0 : i64, tpu.core_type = #tpu.core_type<tc>} {
    %c0 = arith.constant 0 : index
    %c0_0 = arith.constant 0 : index
    %0 = vector.load %arg0[%c0, %c0_0] : memref<8x4xf32, #tpu.memory_space<vmem>>, vector<8x4xf32>
    %c0_1 = arith.constant 0 : index
    %c0_2 = arith.constant 0 : index
    %1 = vector.load %arg1[%c0_1, %c0_2] : memref<8x1xi32, #tpu.memory_space<vmem>>, vector<8x1xi32>
    %2 = tpu.iota {dimensions = array<i32: 1>} : vector<8x4xi32>
    %3 = vector.broadcast %1 : vector<8x1xi32> to vector<8x4xi32>
    %4 = arith.cmpi eq, %2, %3 : vector<8x4xi32>
    %cst = arith.constant dense<0xFF800000> : vector<8xf32>
    %5 = vector.multi_reduction <maximumf>, %0, %cst [1] : vector<8x4xf32> to vector<8xf32>
    %6 = vector.shape_cast %5 : vector<8xf32> to vector<8x1xf32>
    %7 = vector.broadcast %6 : vector<8x1xf32> to vector<8x4xf32>
    %8 = arith.subf %0, %7 : vector<8x4xf32>
    %9 = math.exp %8 : vector<8x4xf32>
    %cst_3 = arith.constant dense<0.000000e+00> : vector<8xf32>
    %10 = vector.multi_reduction <add>, %9, %cst_3 [1] : vector<8x4xf32> to vector<8xf32>
    %11 = vector.shape_cast %10 : vector<8xf32> to vector<8x1xf32>
    %12 = math.log %11 : vector<8x1xf32>
    %13 = vector.broadcast %12 : vector<8x1xf32> to vector<8x4xf32>
    %14 = arith.subf %8, %13 : vector<8x4xf32>
    %cst_4 = arith.constant 0.000000e+00 : f32
    %15 = vector.broadcast %cst_4 : f32 to vector<8x4xf32>
    %16 = arith.select %4, %14, %15 : vector<8x4xi1>, vector<8x4xf32>
    %17 = vector.shape_cast %16 : vector<8x4xf32> to vector<1x8x4xf32>
    %cst_5 = arith.constant dense<0.000000e+00> : vector<1xf32>
    %18 = vector.multi_reduction <add>, %17, %cst_5 [1, 2] : vector<1x8x4xf32> to vector<1xf32>
    %19 = vector.shape_cast %18 : vector<1xf32> to vector<1x1x1xf32>
    %20 = vector.extract %19[0, 0, 0] : f32 from vector<1x1x1xf32>
    %cst_6 = arith.constant 0.000000e+00 : f32
    %21 = arith.subf %cst_6, %20 : f32
    %cst_7 = arith.constant 1.250000e-01 : f32
    %22 = arith.mulf %21, %cst_7 : f32
    %23 = vector.broadcast %6 : vector<8x1xf32> to vector<8x4xf32>
    %24 = arith.cmpf oeq, %0, %23 : vector<8x4xf32>
    %c4_i32 = arith.constant 4 : i32
    %25 = vector.broadcast %c4_i32 : i32 to vector<8x4xi32>
    %26 = arith.select %24, %2, %25 : vector<8x4xi1>, vector<8x4xi32>
    %cst_8 = arith.constant dense<2147483647> : vector<8xi32>
    %27 = vector.multi_reduction <minsi>, %26, %cst_8 [1] : vector<8x4xi32> to vector<8xi32>
    %28 = vector.shape_cast %27 : vector<8xi32> to vector<8x1xi32>
    %29 = arith.cmpi eq, %28, %1 : vector<8x1xi32>
    %30 = arith.extui %29 : vector<8x1xi1> to vector<8x1xi32>
    %31 = arith.sitofp %30 : vector<8x1xi32> to vector<8x1xf32>
    %32 = vector.shape_cast %31 : vector<8x1xf32> to vector<1x8x1xf32>
    %cst_9 = arith.constant dense<0.000000e+00> : vector<1xf32>
    %33 = vector.multi_reduction <add>, %32, %cst_9 [1, 2] : vector<1x8x1xf32> to vector<1xf32>
    %34 = vector.shape_cast %33 : vector<1xf32> to vector<1x1x1xf32>
    %35 = vector.extract %34[0, 0, 0] : f32 from vector<1x1x1xf32>
    %36 = tpu.iota {dimensions = array<i32: 1>} : vector<8x128xi32>
    %c8_i32 = arith.constant 8 : i32
    %37 = vector.broadcast %c8_i32 : i32 to vector<8x128xi32>
    %38 = arith.subi %36, %37 : vector<8x128xi32>
    %39 = vector.broadcast %1 : vector<8x1xi32> to vector<8x128xi32>
    %40 = arith.cmpi eq, %38, %39 : vector<8x128xi32>
    %c12_i32 = arith.constant 12 : i32
    %41 = vector.broadcast %c12_i32 : i32 to vector<8x128xi32>
    %42 = arith.subi %36, %41 : vector<8x128xi32>
    %43 = vector.broadcast %1 : vector<8x1xi32> to vector<8x128xi32>
    %44 = arith.cmpi eq, %42, %43 : vector<8x128xi32>
    %45 = vector.broadcast %29 : vector<8x1xi1> to vector<8x128xi1>
    %46 = arith.andi %44, %45 : vector<8x128xi1>
    %cst_10 = arith.constant 1.000000e+00 : f32
    %cst_11 = arith.constant 0.000000e+00 : f32
    %47 = vector.broadcast %cst_10 : f32 to vector<8x128xf32>
    %48 = vector.broadcast %cst_11 : f32 to vector<8x128xf32>
    %49 = arith.select %40, %47, %48 : vector<8x128xi1>, vector<8x128xf32>
    %cst_12 = arith.constant 1.000000e+00 : f32
    %cst_13 = arith.constant 0.000000e+00 : f32
    %50 = vector.broadcast %cst_12 : f32 to vector<8x128xf32>
    %51 = vector.broadcast %cst_13 : f32 to vector<8x128xf32>
    %52 = arith.select %46, %50, %51 : vector<8x128xi1>, vector<8x128xf32>
    %53 = arith.addf %49, %52 : vector<8x128xf32>
    %cst_14 = arith.constant dense<0.000000e+00> : vector<128xf32>
    %54 = vector.multi_reduction <add>, %53, %cst_14 [0] : vector<8x128xf32> to vector<128xf32>
    %55 = vector.shape_cast %54 : vector<128xf32> to vector<1x128xf32>
    %56 = tpu.iota {dimensions = array<i32: 1>} : vector<1x128xi32>
    %c0_i32 = arith.constant 0 : i32
    %57 = vector.broadcast %c0_i32 : i32 to vector<1x128xi32>
    %58 = arith.cmpi eq, %56, %57 : vector<1x128xi32>
    %c1_i32 = arith.constant 1 : i32
    %59 = vector.broadcast %c1_i32 : i32 to vector<1x128xi32>
    %60 = arith.cmpi eq, %56, %59 : vector<1x128xi32>
    %cst_15 = arith.constant 0.000000e+00 : f32
    %61 = vector.broadcast %35 : f32 to vector<1x128xf32>
    %62 = vector.broadcast %cst_15 : f32 to vector<1x128xf32>
    %63 = arith.select %60, %61, %62 : vector<1x128xi1>, vector<1x128xf32>
    %64 = vector.broadcast %22 : f32 to vector<1x128xf32>
    %65 = arith.select %58, %64, %63 : vector<1x128xi1>, vector<1x128xf32>
    %66 = arith.addf %65, %55 : vector<1x128xf32>
    %c0_16 = arith.constant 0 : index
    %c0_17 = arith.constant 0 : index
    %67 = vector.load %arg2[%c0_16, %c0_17] : memref<1x128xf32, #tpu.memory_space<vmem>>, vector<1x128xf32>
    tpu.vector_store %arg2[%c0_16, %c0_17], %66 {strides = array<i32>} : memref<1x128xf32, #tpu.memory_space<vmem>>, vector<1x128xf32>,
    return
  }
}

</mosaic_0001>

<bundles_post_ra>
// kernel: _emotion_loss_stats.1
= control target key start
LH: loop header
LB: loop body
LE: loop exit
PB: predicated region body
PF: predicated region fallthrough
CT: control target
= control target key end

     0   :  { %vm19_vm0 = vcmask 31744   ;;  %v121_v2 = vmov 0   ;;  %v13_v3 = vlaneseq  ;;  %vm65_vm4 = vcmask 7168   ;;  %s159_s0 = inlined_call_operand.vmem [shape: f32[8,4], index: 0, kind: input, shape index: {}]   ;;  %s160_s1 = inlined_call_operand.vmem [shape: s32[8,1], index: 1, kind: input, shape index: {}]   ;;  %s161_s2 = inlined_call_operand.vmem [shape: f32[1,128], index: 2, kind: output, shape index: {}]  }
   0x1   :  { %v11_v0 = vld [vmem:[%s159_s0] sm:$0xff]  ;;  %115 = vset.pattern.permute.xlu0 %v121_v2  ;;  %116 = vset.pattern.permute.xlu1 %v121_v2  ;;  %v122_v31 = vmov 0.0  }
   0x2   :  { %v20_v1 = vsel %vm19_vm0, %v11_v0, -inf  ;;  %v142_v4 = vand.u32 127, %v13_v3  ;;  %v12_v14 = vld [vmem:[%s160_s1] sm:$0xff] }
   0x3   :  { %21 = vmax.xlane.f32.xlu0 %v20_v1 }
   0x4   :  { %v108_v50 = vadd.s32 4294967284, %v142_v4  ;;  %v107_v51 = vadd.s32 4294967288, %v142_v4  ;;  %vm95_vm10 = vcmp.eq.s32.totalorder %v142_v4, 1  ;;  %vm94_vm11 = vcmp.eq.s32.totalorder %v142_v4, 0 }
  0x90   :  { %v22_v5 = vpop.xlane.xlu0 %21 }
  0x91   :  { %v23_v6 = vsub.f32 %v11_v0, %v22_v5  ;;  %vm45_vm1 = vcmp.eq.f32.partialorder %v11_v0, %v22_v5 }
  0x92   :  { %v46_v7 = vsel %vm45_vm1, %v142_v4, 4 }
  0x93   :  { %v24_v8 = vmul.f32 1.442695, %v23_v6  ;;  %v47_v9 = vsel %vm19_vm0, %v46_v7, 2147483647 }
  0x94   :  { %v49_v10 = vshra.s32 %v47_v9, 16  ;;  %v48_v15 = vand.u32 65535, %v47_v9 }
  0x95   :  { %117 = vpow2.f32 %v24_v8 }
  0x96   :  { %v51_v11 = vcvt.s32.f32 %v49_v10  ;;  %v50_v17 = vcvt.s32.f32 %v48_v15 }
  0x98   :  { %52 = vmin.xlane.f32.xlu0 %v51_v11 }
  0x9f   :  { %v118_v12 = vpop.eup %117 }
  0xa0   :  { %v26_v13 = vsel %vm19_vm0, %v118_v12, 0.0 }
  0xa1   :  { %27 = vadd.xlane.f32.xlu1 %v26_v13 }
  0xae   :  { %16 = vperm.xlu0 %115, %v12_v14  }
 0x125   :  { %v53_v16 = vpop.xlane.xlu0 %52 }
 0x126   :  { %vm54_vm2 = vcmp.eq.f32.partialorder %v51_v11, %v53_v16  ;;  %v59_v26 = vcvt.f32.s32 %v53_v16 }
 0x127   :  { %v55_v18 = vsel %vm54_vm2, %v50_v17, inf }
 0x128   :  { %56 = vmin.xlane.f32.xlu1 %v55_v18  ;;  %v60_v28 = vshll.u32 %v59_v26, 16 }
 0x12d   :  { %v17_v20 = vpop.permute.xlu0 %16 }
 0x12e   :  { %v28_v19 = vpop.xlane.xlu1 %27  ;;  %vm18_vm3 = vcmp.eq.s32.totalorder %v142_v4, %v17_v20  ;;  %vm79_vm7 = vcmp.eq.s32.totalorder %v108_v50, %v17_v20  ;;  %vm77_vm9 = vcmp.eq.s32.totalorder %v107_v51, %v17_v20 }
 0x12f   :  { %119 = vlog2.f32 %v28_v19  ;;  %v85_v53 = vsel %vm77_vm9, 1.0, %v122_v31 }
 0x139   :  { %v120_v21 = vpop.eup %119 }
 0x13a   :  { %v30_v22 = vmul.f32 0.6931472, %v120_v21 }
 0x13c   :  { %v31_v23 = vsub.f32 %v23_v6, %v30_v22 }
 0x13e   :  { %v32_v24 = vsel %vm18_vm3, %v31_v23, 0.0 }
 0x13f   :  { %v33_v25 = vsel %vm19_vm0, %v32_v24, 0.0 }
 0x140   :  { %34 = vadd.xlane.f32.xlu1 %v33_v25 }
 0x1b5   :  { %v57_v27 = vpop.xlane.xlu1 %56 }
 0x1b6   :  { %v58_v29 = vcvt.f32.s32 %v57_v27 }
 0x1b8   :  { %v61_v30 = vadd.s32 %v60_v28, %v58_v29 }
 0x1ba   :  { %vm62_vm5 = vcmp.eq.s32.totalorder %v61_v30, %v12_v14 }
 0x1bb   :  { %v106_v32 = vsel %vm62_vm5, 1.0, %v122_v31  ;;  %v63_v35 = vsel %vm62_vm5, 1, %v121_v2 }
 0x1bc   :  { %v66_v33 = vsel %vm65_vm4, %v106_v32, 0.0 }
 0x1bd   :  { %67 = vadd.xlane.f32.xlu1 %v66_v33 }
 0x1cd   :  { %v35_v34 = vpop.xlane.xlu1 %34 }
 0x1ce   :  { %v36_v36 = vrot.slane %v35_v34, 4  ;;  %81 = vperm.xlu1 %116, %v63_v35  }
 0x1d0   :  { %v37_v37 = vadd.f32 %v36_v36, %v35_v34 }
 0x1d2   :  { %v38_v38 = vrot.slane %v37_v37, 2 }
 0x1d4   :  { %v39_v39 = vadd.f32 %v38_v38, %v37_v37 }
 0x1d6   :  { %v40_v40 = vrot.slane %v39_v39, 1 }
 0x1d8   :  { %v41_v41 = vadd.f32 %v40_v40, %v39_v39 }
 0x1da   :  { %109 = vpush %v41_v41 }
 0x20b   :  { %s110_s1 = spop %109 }
 0x20c   :  { %s43_s12 = ssub.f32 0.0, %s110_s1 }
 0x20e   :  { %s44_s13 = smul.f32 0.125, %s43_s12 }
 0x210   :  { %v98_v61 = vstv %s44_s13 }
 0x24a   :  { %v68_v42 = vpop.xlane.xlu1 %67 }
 0x24b   :  { %v69_v43 = vrot.slane %v68_v42, 4 }
 0x24d   :  { %v70_v44 = vadd.f32 %v69_v43, %v68_v42 }
 0x24e   :  { %v82_v49 = vpop.permute.xlu1 %81 }
 0x24f   :  { %v71_v45 = vrot.slane %v70_v44, 2  ;;  %vm83_vm6 = vcmp.eq.s32.totalorder %v82_v49, 1 }
 0x250   :  { %vm84_vm8 = vmand %vm79_vm7, %vm83_vm6 }
 0x251   :  { %v72_v46 = vadd.f32 %v71_v45, %v70_v44  ;;  %v86_v52 = vsel %vm84_vm8, 1.0, %v122_v31 }
 0x252   :  { %v87_v54 = vadd.f32 %v86_v52, %v85_v53 }
 0x253   :  { %v73_v47 = vrot.slane %v72_v46, 1 }
 0x254   :  { %v88_v55 = vrot.slane %v87_v54, 4 }
 0x255   :  { %v74_v48 = vadd.f32 %v73_v47, %v72_v46 }
 0x256   :  { %v89_v56 = vadd.f32 %v88_v55, %v87_v54 }
 0x257   :  { %111 = vpush %v74_v48 }
 0x258   :  { %v90_v57 = vrot.slane %v89_v56, 2 }
 0x25a   :  { %v91_v58 = vadd.f32 %v90_v57, %v89_v56 }
 0x25c   :  { %v92_v59 = vrot.slane %v91_v58, 1 }
 0x25e   :  { %v93_v62 = vadd.f32 %v92_v59, %v91_v58 }
 0x288   :  { %s112_s14 = spop %111 }
 0x289   :  { %v96_v60 = vstv %s112_s14 }
 0x28a   :  { %v97_v63 = vsel %vm95_vm10, %v96_v60, 0.0 }
 0x28b   :  { %v99_v0 = vsel %vm94_vm11, %v98_v61, %v97_v63 }
 0x28c   :  { %v100_v1 = vadd.f32 %v99_v0, %v93_v62 }
 0x28e   :  { %101 = vst [vmem:[%s161_s2] sm:$0x1] %v100_v1 }

</bundles_post_ra>
